<compile_context>
chip_gen: v5e
topology: v5e:2x2
jax: 0.10.0
libtpu: 0.0.40
codegen_flags: <defaults>
</compile_context>

<pallas_src>
import functools

import jax
import jax.numpy as jnp
from jax.experimental import pallas as pl
from jax.experimental.pallas import tpu as pltpu


def _mlp_kernel(x_ref, w1_ref, b1_ref, w2_ref, b2_ref, o_ref, *, mm_dtype):
    # x arrives as streamed f32; cast to the matmul dtype on the VPU so x only
    # crosses HBM once (no wrapper-side convert).  No-op when mm_dtype == f32.
    x = x_ref[...].astype(mm_dtype)
    # fc1: (H, I) . (tb, I) contracting the input dim of both operands
    #   -> (H, tb), f32 accumulation on the MXU.
    h = jax.lax.dot_general(
        w1_ref[...], x,
        dimension_numbers=(((1,), (1,)), ((), ())),
        preferred_element_type=jnp.float32,
    )
    # Bias (H, 1) broadcasts over lanes; ReLU in f32 on the VPU (v5e-safe).
    h = jnp.maximum(h + b1_ref[...], 0.0)
    # fc2 (output width 1): VPU multiply + XLU sublane reduction instead of a
    # wasted N=1 MXU pass; result is lane-dense (1, tb).  b2 is an SMEM scalar.
    z = jnp.sum(h * w2_ref[...], axis=0, keepdims=True) + b2_ref[0, 0]
    o_ref[...] = jax.nn.sigmoid(z).astype(o_ref.dtype)


def _pick_batch_tile(B, I, tile_b):
    """Batch tile: ~1 MiB of f32 x per grid step, >=2 steps once B >= 256."""
    if B <= 128:
        return B  # single block equal to the full array dims (always legal)
    target_bytes = 1 << 20                                   # ~1 MiB x block
    tb = max(128, (target_bytes // (I * 4)) // 128 * 128)
    if tile_b is not None:
        tb = min(tb, max(128, (int(tile_b) // 128) * 128))
    if B >= 256:
        # v7x has 2 TensorCores: make sure the "parallel" batch axis has work
        # for both.  (On v6e/v5e this just means 2 serial steps; negligible.)
        half = ((-(-B // 2)) + 127) // 128 * 128
        tb = min(tb, half)
    return min(tb, ((B + 127) // 128) * 128)


def _resident_spec(block_shape, single_buffer):
    # Constant index_map -> fetched once, stays VMEM-resident across the grid.
    if single_buffer:
        # v7x / large weights: don't waste VMEM double-buffering a constant block.
        return pl.BlockSpec(block_shape, lambda i: (0, 0),
                            pipeline_mode=pl.Buffered(1))
    return pl.BlockSpec(block_shape, lambda i: (0, 0))


@functools.partial(
    jax.jit, static_argnames=("tile_b", "use_bf16", "single_buffer_weights"))
def neural_net1_forward(x, w1, b1, w2, b2, *, tile_b=None, use_bf16=True,
                        single_buffer_weights=False):
    """Forward pass of NeuralNet1.

    x: (B, input_size); w1: (hidden, input); b1: (hidden,);
    w2: (1, hidden); b2: (1,).  Returns (B, 1) float32 (sigmoid output).
    """
    B, I = x.shape
    H = w1.shape[0]

    mm_dtype = jnp.bfloat16 if use_bf16 else jnp.float32
    x_in = x.astype(jnp.float32)                  # streamed as-is; cast in-kernel
    w1_in = w1.astype(mm_dtype)                   # tiny resident weight
    b1c = b1.astype(jnp.float32).reshape(H, 1)    # (H, 1): broadcasts over lanes
    w2c = w2.astype(jnp.float32).reshape(H, 1)    # (H, 1)
    b2c = b2.astype(jnp.float32).reshape(1, 1)    # SMEM scalar

    tb = _pick_batch_tile(B, I, tile_b)
    grid = (pl.cdiv(B, tb),)

    cost = pl.CostEstimate(
        flops=2 * B * I * H + 4 * B * H,
        transcendentals=B,                                   # sigmoid exp
        bytes_accessed=(B * I * 4 + H * I * w1_in.dtype.itemsize
                        + 2 * H * 4 + 4 + B * 4),
    )

    out = pl.pallas_call(
        functools.partial(_mlp_kernel, mm_dtype=mm_dtype),
        out_shape=jax.ShapeDtypeStruct((1, B), jnp.float32),
        grid=grid,
        in_specs=[
            pl.BlockSpec((tb, I), lambda i: (i, 0)),          # x: streamed (f32)
            _resident_spec((H, I), single_buffer_weights),    # w1: resident
            _resident_spec((H, 1), single_buffer_weights),    # b1: resident
            _resident_spec((H, 1), single_buffer_weights),    # w2: resident
            pl.BlockSpec((1, 1), lambda i: (0, 0),
                         memory_space=pltpu.MemorySpace.SMEM),  # b2: scalar
        ],
        out_specs=pl.BlockSpec((1, tb), lambda i: (0, i)),    # lane-dense output
        compiler_params=pltpu.CompilerParams(
            dimension_semantics=("parallel",),  # v7x: batch split across both TCs
            vmem_limit_bytes=64 * 1024 * 1024,
        ),
        cost_estimate=cost,
    )(x_in, w1_in, b1c, w2c, b2c)

    # (1, B) lane-dense slab back to the torch-style (B, 1) column.
    return out.reshape(B, 1)


def _init_linear(key, out_features, in_features):
    """Deterministic init mimicking torch.nn.Linear default (uniform +-1/sqrt(fan_in))."""
    kw, kb = jax.random.split(key)
    bound = 1.0 / jnp.sqrt(jnp.float32(in_features))
    w = jax.random.uniform(kw, (out_features, in_features), jnp.float32, -bound, bound)
    b = jax.random.uniform(kb, (out_features,), jnp.float32, -bound, bound)
    return w, b


def _reference(x, w1, b1, w2, b2):
    return jax.nn.sigmoid(jnp.maximum(x @ w1.T + b1, 0.0) @ w2.T + b2)


if __name__ == "__main__":
    input_size = 32
    hidden_size = 32

    key = jax.random.PRNGKey(0)
    kx, k1, k2, kx2 = jax.random.split(key, 4)

    w1, b1 = _init_linear(k1, hidden_size, input_size)   # fc1: (hidden, input), (hidden,)
    w2, b2 = _init_linear(k2, 1, hidden_size)            # fc2: (1, hidden), (1,)

    # Small case: single block (block dims == full array dims), grid of 1.
    x_small = jax.random.normal(kx, (8, input_size), jnp.float32)
    ref_small = _reference(x_small, w1, b1, w2, b2)

    out_small = jax.block_until_ready(neural_net1_forward(x_small, w1, b1, w2, b2))
    assert out_small.shape == (8, 1)
    assert jnp.allclose(out_small, ref_small, atol=2e-2, rtol=2e-2), (
        float(jnp.max(jnp.abs(out_small - ref_small))))

    # Same small case on the pure-f32 path (strict parity, no bf16 error).
    out_small_f32 = jax.block_until_ready(
        neural_net1_forward(x_small, w1, b1, w2, b2, use_bf16=False))
    assert jnp.allclose(out_small_f32, ref_small, atol=1e-5, rtol=1e-5), (
        float(jnp.max(jnp.abs(out_small_f32 - ref_small))))

    # Larger batch: exercises the >=2-step batch grid, the ragged final block
    # (no wrapper pad), weight-resident blocks and the lane-dense output path.
    x_big = jax.random.normal(kx2, (272, input_size), jnp.float32)
    out_big = jax.block_until_ready(neural_net1_forward(x_big, w1, b1, w2, b2))
    ref_big = _reference(x_big, w1, b1, w2, b2)
    assert out_big.shape == (272, 1)
    assert jnp.allclose(out_big, ref_big, atol=2e-2, rtol=2e-2), (
        float(jnp.max(jnp.abs(out_big - ref_big))))

    print("KERNEL_OK")
</pallas_src>

<mosaic_0001>
module attributes {stable_mosaic.version = 11 : i64} {
  func.func @_mlp_kernel(%arg0: i32, %arg1: memref<8x32xf32, #tpu.memory_space<vmem>>, %arg2: memref<32x32xbf16, #tpu.memory_space<vmem>>, %arg3: memref<32x1xf32, #tpu.memory_space<vmem>>, %arg4: memref<32x1xf32, #tpu.memory_space<vmem>>, %arg5: memref<1x1xf32, #tpu.memory_space<smem>>, %arg6: memref<1x8xf32, #tpu.memory_space<vmem>>) attributes {dimension_semantics = [#tpu.dimension_semantics<parallel>], iteration_bounds = array<i64: 1>, scalar_prefetch = 0 : i64, scratch_operands = 0 : i64, tpu.core_type = #tpu.core_type<tc>, window_params = [{transform_indices = @transform_0, window_bounds = array<i64: 8, 32>}, {pipeline_mode = #tpu.pipeline_mode<synchronous>, transform_indices = @transform_1, window_bounds = array<i64: 32, 32>}, {pipeline_mode = #tpu.pipeline_mode<synchronous>, transform_indices = @transform_2, window_bounds = array<i64: 32, 1>}, {pipeline_mode = #tpu.pipeline_mode<synchronous>, transform_indices = @transform_3, window_bounds = array<i64: 32, 1>}, {transform_indices = @transform_4, window_bounds = array<i64: 1, 1>}, {transform_indices = @transform_5, window_bounds = array<i64: 1, 8>}]} {
    %c0 = arith.constant 0 : index
    %c0_0 = arith.constant 0 : index
    %0 = vector.load %arg1[%c0, %c0_0] : memref<8x32xf32, #tpu.memory_space<vmem>>, vector<8x32xf32>
    %1 = arith.truncf %0 : vector<8x32xf32> to vector<8x32xbf16>
    %c0_1 = arith.constant 0 : index
    %c0_2 = arith.constant 0 : index
    %2 = vector.load %arg2[%c0_1, %c0_2] : memref<32x32xbf16, #tpu.memory_space<vmem>>, vector<32x32xbf16>
    %cst = arith.constant dense<0.000000e+00> : vector<32x8xf32>
    %3 = tpu.matmul %2, %1, %cst {dimension_numbers = #tpu.dot_dimension_numbers<[1], [1], [0], [0], [0, 0, 1, 0], [], []>} : vector<32x32xbf16>, vector<8x32xbf16>, vector<32x8xf32> -> vector<32x8xf32>
    %c0_3 = arith.constant 0 : index
    %c0_4 = arith.constant 0 : index
    %4 = vector.load %arg3[%c0_3, %c0_4] : memref<32x1xf32, #tpu.memory_space<vmem>>, vector<32x1xf32>
    %5 = vector.broadcast %4 : vector<32x1xf32> to vector<32x8xf32>
    %6 = arith.addf %3, %5 : vector<32x8xf32>
    %cst_5 = arith.constant 0.000000e+00 : f32
    %7 = vector.broadcast %cst_5 : f32 to vector<32x8xf32>
    %8 = arith.maximumf %6, %7 : vector<32x8xf32>
    %c0_6 = arith.constant 0 : index
    %c0_7 = arith.constant 0 : index
    %9 = vector.load %arg4[%c0_6, %c0_7] : memref<32x1xf32, #tpu.memory_space<vmem>>, vector<32x1xf32>
    %10 = vector.broadcast %9 : vector<32x1xf32> to vector<32x8xf32>
    %11 = arith.mulf %8, %10 : vector<32x8xf32>
    %cst_8 = arith.constant dense<0.000000e+00> : vector<8xf32>
    %12 = vector.multi_reduction <add>, %11, %cst_8 [0] : vector<32x8xf32> to vector<8xf32>
    %13 = vector.shape_cast %12 : vector<8xf32> to vector<1x8xf32>
    %c0_9 = arith.constant 0 : index
    %c0_10 = arith.constant 0 : index
    %14 = memref.load %arg5[%c0_9, %c0_10] : memref<1x1xf32, #tpu.memory_space<smem>>
    %15 = vector.broadcast %14 : f32 to vector<1x8xf32>
    %16 = arith.addf %13, %15 : vector<1x8xf32>
    %17 = arith.negf %16 : vector<1x8xf32>
    %18 = math.exp %17 : vector<1x8xf32>
    %cst_11 = arith.constant 1.000000e+00 : f32
    %19 = vector.broadcast %cst_11 : f32 to vector<1x8xf32>
    %20 = arith.addf %19, %18 : vector<1x8xf32>
    %21 = arith.divf %19, %20 : vector<1x8xf32>
    %c0_12 = arith.constant 0 : index
    %c0_13 = arith.constant 0 : index
    %22 = vector.load %arg6[%c0_12, %c0_13] : memref<1x8xf32, #tpu.memory_space<vmem>>, vector<1x8xf32>
    tpu.vector_store %arg6[%c0_12, %c0_13], %21 {strides = array<i32>} : memref<1x8xf32, #tpu.memory_space<vmem>>, vector<1x8xf32>,
    return
  }
  func.func @transform_0(%arg0: i32) -> (i32, i32) {
    %c0_i32 = arith.constant 0 : i32
    %c0_i32_0 = arith.constant 0 : i32
    return %arg0, %c0_i32 : i32, i32
  }
  func.func @transform_1(%arg0: i32) -> (i32, i32) {
    %c0_i32 = arith.constant 0 : i32
    %c0_i32_0 = arith.constant 0 : i32
    %c0_i32_1 = arith.constant 0 : i32
    return %c0_i32, %c0_i32_0 : i32, i32
  }
  func.func @transform_2(%arg0: i32) -> (i32, i32) {
    %c0_i32 = arith.constant 0 : i32
    %c0_i32_0 = arith.constant 0 : i32
    %c0_i32_1 = arith.constant 0 : i32
    return %c0_i32, %c0_i32_0 : i32, i32
  }
  func.func @transform_3(%arg0: i32) -> (i32, i32) {
    %c0_i32 = arith.constant 0 : i32
    %c0_i32_0 = arith.constant 0 : i32
    %c0_i32_1 = arith.constant 0 : i32
    return %c0_i32, %c0_i32_0 : i32, i32
  }
  func.func @transform_4(%arg0: i32) -> (i32, i32) {
    %c0_i32 = arith.constant 0 : i32
    %c0_i32_0 = arith.constant 0 : i32
    %c0_i32_1 = arith.constant 0 : i32
    return %c0_i32, %c0_i32_0 : i32, i32
  }
  func.func @transform_5(%arg0: i32) -> (i32, i32) {
    %c0_i32 = arith.constant 0 : i32
    %c0_i32_0 = arith.constant 0 : i32
    return %c0_i32, %arg0 : i32, i32
  }
}

</mosaic_0001>

<bundles_post_ra>
// kernel: neural_net1_forward.1
= control target key start
LH: loop header
LB: loop body
LE: loop exit
PB: predicated region body
PF: predicated region fallthrough
CT: control target
= control target key end

     0   :  { %vm63_vm0 = vcmask 261120   ;;  %v227_v3 = vmov 0   ;;  %s301_s0 = inlined_call_operand.vmem [shape: f32[8,32], index: 0, kind: input, shape index: {}]   ;;  %s302_s1 = inlined_call_operand.vmem [shape: bf16[32,32], index: 1, kind: input, shape index: {}]   ;;  %s303_s2 = inlined_call_operand.vmem [shape: f32[32,1], index: 2, kind: input, shape index: {}]   ;;  %s304_s3 = inlined_call_operand.vmem [shape: f32[32,1], index: 3, kind: input, shape index: {}]   ;;  %s305_s4 = inlined_call_operand.<no memory space> [shape: f32[1,1], index: 4, kind: input, shape index: {}]   ;;  %s306_s5 = inlined_call_operand.hbm [shape: f32[1,8], index: 5, kind: output, shape index: {}]  }
   0x1   :  { %v29_v0 = vld [vmem:[%s303_s2] sm:$0xff]  ;;  %v31_v2 = vld [vmem:[%s303_s2 + $0x10] sm:$0xff]  ;;  %194 = vset.pattern.permute.xlu0 %v227_v3  ;;  %195 = vset.pattern.permute.xlu1 %v227_v3 }
   0x2   :  { %v23_v1 = vld [vmem:[%s301_s0] sm:$0xff]  ;;  %35 = vperm.xlu0 %194, %v29_v0   ;;  %45 = vperm.xlu1 %195, %v31_v2  }
   0x3   :  { %v24_v4 = vpack.c.bf16 %v23_v1, %v23_v1  ;;  %196 = vset.pattern.permute.xlu2 %v227_v3  ;;  %v96_v6 = vld [vmem:[%s304_s3] sm:$0xff] }
   0x5   :  { %v71_v5 = vsel %vm63_vm0, %v24_v4, 0 }
   0x6   :  { %11 = vsyncpa [#allocation4], 0  ;;  %80 = vmatpush.bf16.xpose.msra.mxu0 %v71_v5  ;;  %191 = vmatpush.bf16.xpose.msra.mxu1 %v71_v5  ;;  %v189_v7 = vld [vmem:[%s302_s1] sm:$0xff]  ;;  %v190_v8 = vld [vmem:[%s302_s1 + $0x8] sm:$0xff]  ;;  %vm124_vm1 = vcmask 64512   ;;  %v139_v50 = vstv %s305_s4  ;;  %s228_s13 = smov [#allocation3]  }
   0x7   :  { %102 = vperm.xlu2 %196, %v96_v6   ;;  %v30_v9 = vld [vmem:[%s303_s2 + $0x8] sm:$0xff]  ;;  %v32_v10 = vld [vmem:[%s303_s2 + $0x18] sm:$0xff]  ;;  %v98_v12 = vld [vmem:[%s304_s3 + $0x10] sm:$0xff]  ;;  %s167_s14 = sshll.u32 %s228_s13, 4  ;;  %s169_s4 = sshll.u32 %s306_s5, 4  ;;  %vm160_vm5 = vcmask 57344   ;;  %s168_s14 = int_to_ptr.vmem [resolvable:$true] %s167_s14  ;;  %s170_s4 = int_to_ptr.hbm [resolvable:$true] %s169_s4 }
   0x8   :  { %v97_v11 = vld [vmem:[%s304_s3 + $0x8] sm:$0xff]  ;;  %v99_v13 = vld [vmem:[%s304_s3 + $0x18] sm:$0xff] }
   0xa   :  { %40 = vperm.xlu0 %194, %v30_v9   ;;  %50 = vperm.xlu1 %195, %v32_v10  }
   0xd   :  { %186 = vmatmul.msk.bf16.vlgmr.msra.gmra.mxu0 %vm63_vm0, %v189_v7  ;;  %187 = vmatmul.msk.bf16.vlgmr.msra.gmra.mxu1 %vm63_vm0, %v190_v8 }
   0xf   :  { %107 = vperm.xlu2 %196, %v97_v11  }
  0x12   :  { %112 = vperm.xlu0 %194, %v98_v12   ;;  %117 = vperm.xlu1 %195, %v99_v13  }
  0x61   :  { %v103_v19 = vpop.permute.xlu2 %102 }
  0x69   :  { %v108_v33 = vpop.permute.xlu2 %107 }
  0x74   :  { %v36_v14 = vpop.permute.xlu0 %35  ;;  %v46_v15 = vpop.permute.xlu1 %45 }
  0x7c   :  { %v41_v18 = vpop.permute.xlu0 %40  ;;  %v51_v21 = vpop.permute.xlu1 %50 }
  0x84   :  { %v113_v32 = vpop.permute.xlu0 %112  ;;  %v118_v36 = vpop.permute.xlu1 %117 }
  0x8a   :  { %v82_v16 = vpop.f32.mrf.mxu0  ;;  %v87_v17 = vpop.f32.mrf.mxu1 }
  0x8b   :  { %v83_v20 = vadd.f32 %v82_v16, %v36_v14  ;;  %v88_v22 = vadd.f32 %v87_v17, %v46_v15 }
  0x8d   :  { %v92_v23 = vmax.f32 %v83_v20, 0.0  ;;  %v94_v26 = vmax.f32 %v88_v22, 0.0 }
  0x8f   :  { %v120_v29 = vmul.f32 %v103_v19, %v92_v23  ;;  %v122_v34 = vmul.f32 %v113_v32, %v94_v26 }
  0x91   :  { %v125_v37 = vsel %vm124_vm1, %v120_v29, 0.0  ;;  %v128_v41 = vsel %vm124_vm1, %v122_v34, 0.0 }
  0x92   :  { %v84_v24 = vpop.f32.mrf.mxu0  ;;  %v89_v25 = vpop.f32.mrf.mxu1 }
  0x93   :  { %v85_v27 = vadd.f32 %v84_v24, %v41_v18  ;;  %v90_v28 = vadd.f32 %v89_v25, %v51_v21 }
  0x95   :  { %v93_v30 = vmax.f32 %v85_v27, 0.0  ;;  %v95_v31 = vmax.f32 %v90_v28, 0.0 }
  0x97   :  { %v121_v35 = vmul.f32 %v108_v33, %v93_v30  ;;  %v123_v39 = vmul.f32 %v118_v36, %v95_v31 }
  0x99   :  { %v126_v38 = vsel %vm124_vm1, %v121_v35, 0.0  ;;  %v130_v43 = vsel %vm124_vm1, %v123_v39, 0.0 }
  0x9a   :  { %v127_v40 = vadd.f32 %v126_v38, %v125_v37 }
  0x9c   :  { %v129_v42 = vadd.f32 %v128_v41, %v127_v40 }
  0x9e   :  { %v131_v44 = vadd.f32 %v130_v43, %v129_v42 }
  0xa0   :  { %v132_v45 = vrot.slane %v131_v44, 4 }
  0xa2   :  { %v133_v46 = vadd.f32 %v132_v45, %v131_v44 }
  0xa4   :  { %v134_v47 = vrot.slane %v133_v46, 2 }
  0xa6   :  { %v135_v48 = vadd.f32 %v134_v47, %v133_v46 }
  0xa8   :  { %v136_v49 = vrot.slane %v135_v48, 1 }
  0xaa   :  { %v137_v51 = vadd.f32 %v136_v49, %v135_v48 }
  0xac   :  { %v140_v52 = vadd.f32 %v139_v50, %v137_v51 }
  0xae   :  { %v188_v53 = vmul.f32 -1.442695, %v140_v52 }
  0xb0   :  { %197 = vpow2.f32 %v188_v53 }
  0xb6   :  { %v198_v54 = vpop.eup %197 }
  0xb7   :  { %v144_v55 = vadd.f32 1.0, %v198_v54 }
  0xb9   :  { %199 = vrcp.f32 %v144_v55  ;;  %v156_v59 = vand.u32 2147483648, %v144_v55  ;;  %v154_v61 = vand.u32 2147483647, %v144_v55  ;;  %vm150_vm3 = vweird.f32 %v144_v55 }
  0xbb   :  { %v157_v63 = vor.u32 1.1754944e-38, %v156_v59  ;;  %vm155_vm6 = vcmp.eq.f32.partialorder %v154_v61, 8.507059e+37 }
  0xbf   :  { %v200_v56 = vpop.eup %199 }
  0xc0   :  { %v146_v57 = vmul.f32 %v200_v56, %v144_v55  ;;  %vm151_vm2 = vweird.f32 %v200_v56 }
  0xc1   :  { %vm152_vm4 = vmor %vm150_vm3, %vm151_vm2 }
  0xc2   :  { %v147_v58 = vsub.f32 1.0, %v146_v57 }
  0xc4   :  { %v148_v60 = vmul.f32 %v200_v56, %v147_v58 }
  0xc6   :  { %v149_v62 = vadd.f32 %v200_v56, %v148_v60 }
  0xc8   :  { %v153_v0 = vsel %vm152_vm4, %v200_v56, %v149_v62 }
  0xc9   :  { %v158_v1 = vsel %vm155_vm6, %v157_v63, %v153_v0 }
  0xca   :  { %161 = vst.msk [vmem:[#allocation3] sm:$0x1] %vm160_vm5, %v158_v1 }
  0xcb   :  { %172 = dma.vmem_to_hbm [thread:$0]  %s168_s14, 16, %s170_s4, [#allocation4]  }
  0xcc   :  { %225 = dma.done.wait [#allocation4], 16  }
  0xcd   :  { %226 = vsyncadd [#allocation4], 4294967280 }
  0xce   :  { %177 = vsyncpa [#allocation4], 1 }

</bundles_post_ra>
